<compile_context>
chip_gen: v6e
topology: v6e:2x2x1
jax: 0.10.0
libtpu: 0.0.40
codegen_flags: <defaults>
</compile_context>

<pallas_src>
import jax
import jax.numpy as jnp
import numpy as np
from jax.experimental import pallas as pl
from jax.experimental.pallas import tpu as pltpu


# ----------------------------------------------------------------------------- kernel ---
def _node_attention_kernel(enc_ref, x_ref, kemb_ref, mask_ref,
                           wa_ref, ba_ref, whe_ref, whd_ref, bh_ref,
                           out_ref, ks_ref):
    f32 = jnp.float32
    Bb, Sb, Dp = enc_ref.shape
    N = x_ref.shape[1]
    F2 = x_ref.shape[2]
    Hp = out_ref.shape[2]
    mm = enc_ref.dtype  # matmul dtype; the wrapper already cast every MXU operand

    enc = enc_ref[...]                                           # (Bb, Sb, Dp)

    # projected = Tanh(Linear(2D -> D))(x): one 2-D MXU pass via a leading-dim reshape.
    x2 = x_ref[...].reshape(Bb * N, F2)
    proj_f32 = jnp.tanh(
        jnp.dot(x2, wa_ref[...], preferred_element_type=f32) + ba_ref[...])
    proj = proj_f32.reshape(Bb, N, Dp).astype(mm)                # (Bb, N, Dp)

    # Two einsums sharing the enc operand (no concat, no sub-128-lane slicing).
    # `scale` is already folded into kemb by the wrapper.
    logits = jnp.einsum('bsd,bnd->bsn', enc, proj,
                        preferred_element_type=f32)              # (Bb, Sb, N)
    k_logits = jnp.einsum('bsd,bkd->bsk', enc, kemb_ref[...],
                          preferred_element_type=f32)            # (Bb, Sb, K)

    # mask arrives (Bb, Sb, 1) with S on sublanes: broadcasts directly, no relayout.
    mask = mask_ref[...] > 0.5
    logits = jnp.where(mask, -1e18, logits)
    k_logits = jnp.where(mask, -1e18, k_logits)

    # softmax over nodes (f32; approx reciprocal on the EUP slot is fine internally).
    m = jnp.max(logits, axis=-1, keepdims=True)
    e = jnp.exp(logits - m)
    scores = e * pl.reciprocal(jnp.sum(e, axis=-1, keepdims=True), approx=True)

    # ks = max(softmax(k_logits)) == 1 / sum(exp(k_logits - rowmax)).
    # Exact divide: k_scores_batch is a user-visible output.
    km = jnp.max(k_logits, axis=-1, keepdims=True)
    kden = jnp.sum(jnp.exp(k_logits - km), axis=-1, keepdims=True)   # (Bb, Sb, 1)
    ks_ref[...] = (1.0 / kden).astype(ks_ref.dtype)

    # dot_x = scores @ projected; hidden layer with a pre-split weight (concat folded).
    dot_x = jnp.einsum('bsn,bnd->bsd', scores.astype(mm), proj,
                       preferred_element_type=f32)               # (Bb, Sb, Dp)
    enc2 = enc.reshape(Bb * Sb, Dp)
    dx2 = dot_x.astype(mm).reshape(Bb * Sb, Dp)
    out = jnp.tanh(
        jnp.dot(enc2, whe_ref[...], preferred_element_type=f32)
        + jnp.dot(dx2, whd_ref[...], preferred_element_type=f32)
        + bh_ref[...])                                           # (Bb*Sb, Hp) f32
    out_ref[...] = out.reshape(Bb, Sb, Hp).astype(out_ref.dtype)


# ---------------------------------------------------------------------------- helpers ---
def _round_up(v, m):
    return (v + m - 1) // m * m


def _pad_axis(a, axis, new_size, value=0.0):
    old = a.shape[axis]
    if new_size == old:
        return a
    pads = [(0, 0)] * a.ndim
    pads[axis] = (0, new_size - old)
    return jnp.pad(a, pads, constant_values=value)


def _vmem_budget():
    """Returns (block_footprint_budget_bytes, vmem_limit_bytes), per TPU generation."""
    cap = 64 << 20
    is_v5e = False
    try:
        cap = int(pltpu.get_tpu_info().vmem_capacity_bytes)
    except Exception:
        pass
    try:
        kind = jax.devices()[0].device_kind.lower()
        is_v5e = ('v5 lite' in kind) or ('v5e' in kind) or ('v5litepod' in kind)
    except Exception:
        pass
    if is_v5e:
        # ~0.82 TB/s HBM, single vst slot: smaller blocks, insist on pipeline depth.
        return 6 << 20, 48 << 20
    if cap >= (100 << 20):
        # v6e: 128 MiB physical VMEM -> big blocks approach the HBM roofline.
        return 20 << 20, 64 << 20
    # v7x (64 MiB VMEM per TensorCore) or unknown: leave headroom under the scoped limit.
    return 12 << 20, 48 << 20


def _block_footprint_bytes(bb, sb, N, K, Dp, F2p, Hp, mm_bytes):
    """Double-buffered block I/O + (not double-buffered) in-kernel temporaries."""
    io = (bb * sb * Dp * mm_bytes             # enc block
          + bb * N * F2p * mm_bytes           # x block
          + bb * K * Dp * mm_bytes            # kemb block (scale folded)
          + bb * sb * 4                       # mask block
          + bb * sb * Hp * 4                  # out block
          + bb * sb * 4                       # ks block
          + (F2p * Dp + 2 * Dp * Hp) * mm_bytes + (Dp + Hp) * 4)  # weights / biases
    tmp = (bb * N * Dp * (4 + mm_bytes)       # projected (f32 + matmul-dtype copy)
           + 3 * bb * sb * (N + K) * 4        # logits/k_logits, exp, scores
           + bb * sb * Dp * (4 + mm_bytes)    # dot_x (f32 + matmul-dtype copy)
           + bb * sb * Hp * 4)                # pre-store f32 hidden output
    return 2 * io + int(1.5 * tmp)


def _pick_blocks(B, Sp, N, K, Dp, F2p, Hp, mm_bytes, budget):
    def fp(bb_, sb_):
        return _block_footprint_bytes(bb_, sb_, N, K, Dp, F2p, Hp, mm_bytes)

    sb = max(8, (min(Sp, 512) // 8) * 8)
    bb = 1
    for cand in range(min(B, 128), 0, -1):
        if fp(cand, sb) <= budget:
            bb = cand
            break
    while sb > 8 and fp(1, sb) > budget:
        sb = max(8, ((sb // 2) // 8) * 8)

    # Pipeline depth / megacore: aim for >= 4 grid steps (>= 2 per v7x TensorCore).
    def steps():
        return pl.cdiv(B, bb) * pl.cdiv(Sp, sb)

    while steps() < 4 and (bb > 1 or sb > 8):
        if bb > 1:
            bb = (bb + 1) // 2
        else:
            sb = max(8, _round_up(sb // 2, 8))
    return bb, sb


# ---------------------------------------------------------------------------- wrapper ---
def node_attention_forward(enc_outputs, x, key_concepts, mask_enc,
                           wa, ba, wh, bh, emb_table,
                           matmul_dtype=jnp.bfloat16, out_dtype=jnp.float32,
                           block_batch=None, block_seq=None, pad_lanes=True):
    """Returns (concat_enc_outputs (B, S, hid), k_scores_batch (B, S))."""
    B, S, D = enc_outputs.shape
    N = x.shape[1]
    K = key_concepts.shape[1]
    F2 = x.shape[2]
    H = wh.shape[1]
    scale = float(D) ** (-0.5)
    mm_bytes = jnp.dtype(matmul_dtype).itemsize

    # --- glue (not the hot path): gather, scale fold, weight split, mask layout ---------
    kemb = jnp.take(emb_table, key_concepts, axis=0) * scale      # (B, K, D), scale folded
    wh_enc, wh_dx = wh[:D, :], wh[D:, :]                          # cat([enc,dot_x]) @ wh
    mask_f = mask_enc.astype(jnp.float32)[:, :, None]             # (B, S, 1), S on sublanes

    # --- caller-side padding: lane-dense D / 2D / hid (mult of 128), S to mult of 8 -----
    if pad_lanes:
        Dp, Hp, F2p = _round_up(D, 128), _round_up(H, 128), _round_up(F2, 128)
    else:
        Dp, Hp, F2p = D, H, F2
    Sp = _round_up(S, 8)

    budget, vmem_limit = _vmem_budget()
    bb, sb = block_batch, block_seq
    if bb is None or sb is None:
        abb, asb = _pick_blocks(B, Sp, N, K, Dp, F2p, Hp, mm_bytes, budget)
        bb = abb if bb is None else bb
        sb = asb if sb is None else sb
    Bp = _round_up(B, bb)
    Sp = _round_up(Sp, sb)

    # Pad + cast the MXU operands once in the wrapper (halves DMA traffic vs f32-in).
    def prep(a, tgt_shape, dtype, pad_value=0.0):
        for ax, ts in enumerate(tgt_shape):
            a = _pad_axis(a, ax, ts, pad_value)
        return a.astype(dtype)

    enc_p = prep(enc_outputs, (Bp, Sp, Dp), matmul_dtype)
    x_p = prep(x, (Bp, N, F2p), matmul_dtype)
    kemb_p = prep(kemb, (Bp, K, Dp), matmul_dtype)
    mask_p = prep(mask_f, (Bp, Sp, 1), jnp.float32, pad_value=1.0)
    wa_p = prep(wa, (F2p, Dp), matmul_dtype)
    ba_p = prep(ba.reshape(1, D), (1, Dp), jnp.float32)
    whe_p = prep(wh_enc, (Dp, Hp), matmul_dtype)
    whd_p = prep(wh_dx, (Dp, Hp), matmul_dtype)
    bh_p = prep(bh.reshape(1, H), (1, Hp), jnp.float32)

    grid = (Bp // bb, Sp // sb)   # seq innermost: x/kemb blocks stay resident across it

    out_p, ks_p = pl.pallas_call(
        _node_attention_kernel,
        out_shape=(
            jax.ShapeDtypeStruct((Bp, Sp, Hp), out_dtype),
            jax.ShapeDtypeStruct((Bp, Sp, 1), jnp.float32),
        ),
        grid=grid,
        in_specs=[
            pl.BlockSpec((bb, sb, Dp), lambda b, s: (b, s, 0)),     # enc_outputs
            pl.BlockSpec((bb, N, F2p), lambda b, s: (b, 0, 0)),     # x (resident across s)
            pl.BlockSpec((bb, K, Dp), lambda b, s: (b, 0, 0)),      # key-concept embeddings
            pl.BlockSpec((bb, sb, 1), lambda b, s: (b, s, 0)),      # mask (S on sublanes)
            pl.BlockSpec((F2p, Dp), lambda b, s: (0, 0)),           # W_attention (in,out)
            pl.BlockSpec((1, Dp), lambda b, s: (0, 0)),             # b_attention
            pl.BlockSpec((Dp, Hp), lambda b, s: (0, 0)),            # W_hidden[:D]
            pl.BlockSpec((Dp, Hp), lambda b, s: (0, 0)),            # W_hidden[D:]
            pl.BlockSpec((1, Hp), lambda b, s: (0, 0)),             # b_hidden
        ],
        out_specs=(
            pl.BlockSpec((bb, sb, Hp), lambda b, s: (b, s, 0)),     # lane-dense hidden out
            pl.BlockSpec((bb, sb, 1), lambda b, s: (b, s, 0)),      # ks (S on sublanes)
        ),
        compiler_params=pltpu.CompilerParams(
            dimension_semantics=("parallel", "parallel"),
            vmem_limit_bytes=vmem_limit),
    )(enc_p, x_p, kemb_p, mask_p, wa_p, ba_p, whe_p, whd_p, bh_p)

    return out_p[:B, :S, :H], ks_p[:B, :S, 0]


# -------------------------------------------------------------------------- reference ---
def _reference(enc, x, key_concepts, mask_enc, wa, ba, wh, bh, emb_table):
    scale = enc.shape[-1] ** (-0.5)
    proj = jnp.tanh(x @ wa + ba)                                   # (B, N, D)
    logits = jnp.einsum('bsd,bnd->bsn', enc, proj)
    kemb = jnp.take(emb_table, key_concepts, axis=0)
    k_logits = jnp.einsum('bsd,bkd->bsk', enc * scale, kemb)
    m = mask_enc[..., None]
    logits = jnp.where(m, -1e18, logits)
    k_logits = jnp.where(m, -1e18, k_logits)
    scores = jax.nn.softmax(logits, axis=-1)
    ks = jnp.max(jax.nn.softmax(k_logits, axis=-1), axis=-1)
    dot_x = jnp.einsum('bsn,bnd->bsd', scores, proj)
    temp = jnp.concatenate([enc, dot_x], axis=-1)
    out = jnp.tanh(temp @ wh + bh)
    return out, ks


if __name__ == "__main__":
    # Small shapes consistent with the module.  The PyTorch forward overwrites a
    # (B, S, d_model) buffer with the (S, hid) hidden_layer output, so hid == d_model.
    B, S, D, N, K, V = 2, 16, 32, 8, 4, 12
    HID = D

    key = jax.random.PRNGKey(0)
    k = jax.random.split(key, 8)

    enc_outputs = jax.random.normal(k[0], (B, S, D), dtype=jnp.float32)
    x = jax.random.normal(k[1], (B, N, 2 * D), dtype=jnp.float32)
    key_concepts = jax.random.randint(k[2], (B, K), 0, V, dtype=jnp.int32)
    lengths = jnp.array([12, 16], dtype=jnp.int32)
    mask_enc = jnp.arange(S)[None, :] >= lengths[:, None]          # True => masked

    # Deterministic parameter init (synthetic, PyTorch-Linear-like uniform ranges).
    bound = 1.0 / np.sqrt(2 * D)
    wa = jax.random.uniform(k[3], (2 * D, D), jnp.float32, -bound, bound)
    ba = jax.random.uniform(k[4], (D,), jnp.float32, -bound, bound)
    wh = jax.random.uniform(k[5], (2 * D, HID), jnp.float32, -bound, bound)
    bh = jax.random.uniform(k[6], (HID,), jnp.float32, -bound, bound)
    emb_table = jax.random.normal(k[7], (V, D), dtype=jnp.float32)

    ref_out, ref_ks = _reference(
        enc_outputs, x, key_concepts, mask_enc, wa, ba, wh, bh, emb_table)

    # Strict f32 check, lane-padded path (D/H -> 128, (batch, seq) grid).
    out32, ks32 = node_attention_forward(
        enc_outputs, x, key_concepts, mask_enc, wa, ba, wh, bh, emb_table,
        matmul_dtype=jnp.float32, pad_lanes=True)
    jax.block_until_ready((out32, ks32))
    np.testing.assert_allclose(np.asarray(out32), np.asarray(ref_out), rtol=2e-3, atol=2e-3)
    np.testing.assert_allclose(np.asarray(ks32), np.asarray(ref_ks), rtol=2e-3, atol=2e-3)

    # Strict f32 check, unpadded path (full-dim feature blocks).
    out_u, ks_u = node_attention_forward(
        enc_outputs, x, key_concepts, mask_enc, wa, ba, wh, bh, emb_table,
        matmul_dtype=jnp.float32, pad_lanes=False)
    jax.block_until_ready((out_u, ks_u))
    np.testing.assert_allclose(np.asarray(out_u), np.asarray(ref_out), rtol=2e-3, atol=2e-3)
    np.testing.assert_allclose(np.asarray(ks_u), np.asarray(ref_ks), rtol=2e-3, atol=2e-3)

    # Performance path: bf16 MXU operands prepared in the wrapper, f32 accumulate,
    # f32 softmax/tanh/exp (v5e has no bf16 VPU/EUP).  Looser tolerance for bf16 rounding.
    out_bf, ks_bf = node_attention_forward(
        enc_outputs, x, key_concepts, mask_enc, wa, ba, wh, bh, emb_table,
        matmul_dtype=jnp.bfloat16, pad_lanes=True)
    jax.block_until_ready((out_bf, ks_bf))
    np.testing.assert_allclose(np.asarray(out_bf), np.asarray(ref_out), rtol=3e-2, atol=3e-2)
    np.testing.assert_allclose(np.asarray(ks_bf), np.asarray(ref_ks), rtol=3e-2, atol=3e-2)

    print("KERNEL_OK")
</pallas_src>

<mosaic_0001>
module attributes {stable_mosaic.version = 11 : i64} {
  func.func @_node_attention_kernel(%arg0: i32, %arg1: i32, %arg2: memref<1x8x128xf32, #tpu.memory_space<vmem>>, %arg3: memref<1x8x128xf32, #tpu.memory_space<vmem>>, %arg4: memref<1x4x128xf32, #tpu.memory_space<vmem>>, %arg5: memref<1x8x1xf32, #tpu.memory_space<vmem>>, %arg6: memref<128x128xf32, #tpu.memory_space<vmem>>, %arg7: memref<1x128xf32, #tpu.memory_space<vmem>>, %arg8: memref<128x128xf32, #tpu.memory_space<vmem>>, %arg9: memref<128x128xf32, #tpu.memory_space<vmem>>, %arg10: memref<1x128xf32, #tpu.memory_space<vmem>>, %arg11: memref<1x8x128xf32, #tpu.memory_space<vmem>>, %arg12: memref<1x8x1xf32, #tpu.memory_space<vmem>>) attributes {dimension_semantics = [#tpu.dimension_semantics<parallel>, #tpu.dimension_semantics<parallel>], iteration_bounds = array<i64: 2, 2>, scalar_prefetch = 0 : i64, scratch_operands = 0 : i64, tpu.core_type = #tpu.core_type<tc>, window_params = [{transform_indices = @transform_0, window_bounds = array<i64: 1, 8, 128>}, {transform_indices = @transform_1, window_bounds = array<i64: 1, 8, 128>}, {transform_indices = @transform_2, window_bounds = array<i64: 1, 4, 128>}, {transform_indices = @transform_3, window_bounds = array<i64: 1, 8, 1>}, {pipeline_mode = #tpu.pipeline_mode<synchronous>, transform_indices = @transform_4, window_bounds = array<i64: 128, 128>}, {pipeline_mode = #tpu.pipeline_mode<synchronous>, transform_indices = @transform_5, window_bounds = array<i64: 1, 128>}, {pipeline_mode = #tpu.pipeline_mode<synchronous>, transform_indices = @transform_6, window_bounds = array<i64: 128, 128>}, {pipeline_mode = #tpu.pipeline_mode<synchronous>, transform_indices = @transform_7, window_bounds = array<i64: 128, 128>}, {pipeline_mode = #tpu.pipeline_mode<synchronous>, transform_indices = @transform_8, window_bounds = array<i64: 1, 128>}, {transform_indices = @transform_9, window_bounds = array<i64: 1, 8, 128>}, {transform_indices = @transform_10, window_bounds = array<i64: 1, 8, 1>}]} {
    %c0 = arith.constant 0 : index
    %c0_0 = arith.constant 0 : index
    %c0_1 = arith.constant 0 : index
    %0 = vector.load %arg2[%c0, %c0_0, %c0_1] : memref<1x8x128xf32, #tpu.memory_space<vmem>>, vector<1x8x128xf32>
    %c0_2 = arith.constant 0 : index
    %c0_3 = arith.constant 0 : index
    %c0_4 = arith.constant 0 : index
    %1 = vector.load %arg3[%c0_2, %c0_3, %c0_4] : memref<1x8x128xf32, #tpu.memory_space<vmem>>, vector<1x8x128xf32>
    %2 = vector.shape_cast %1 : vector<1x8x128xf32> to vector<8x128xf32>
    %c0_5 = arith.constant 0 : index
    %c0_6 = arith.constant 0 : index
    %3 = vector.load %arg6[%c0_5, %c0_6] : memref<128x128xf32, #tpu.memory_space<vmem>>, vector<128x128xf32>
    %cst = arith.constant dense<0.000000e+00> : vector<8x128xf32>
    %4 = tpu.matmul %2, %3, %cst {dimension_numbers = #tpu.dot_dimension_numbers<[1], [0], [0], [1], [0, 0, 1, 1], [], []>} : vector<8x128xf32>, vector<128x128xf32>, vector<8x128xf32> -> vector<8x128xf32>
    %c0_7 = arith.constant 0 : index
    %c0_8 = arith.constant 0 : index
    %5 = vector.load %arg7[%c0_7, %c0_8] : memref<1x128xf32, #tpu.memory_space<vmem>>, vector<1x128xf32>
    %6 = vector.broadcast %5 : vector<1x128xf32> to vector<8x128xf32>
    %7 = arith.addf %4, %6 : vector<8x128xf32>
    %8 = math.tanh %7 : vector<8x128xf32>
    %9 = vector.shape_cast %8 : vector<8x128xf32> to vector<1x8x128xf32>
    "tpu.trace_start"() <{level = 10 : i32, message = "bsd,bnd->bsn"}> : () -> ()
    %cst_9 = arith.constant dense<0.000000e+00> : vector<1x8x8xf32>
    %10 = tpu.matmul %0, %9, %cst_9 {dimension_numbers = #tpu.dot_dimension_numbers<[2], [2], [1], [1], [0, 0, 0, 1, 1, 1], [0], [0]>} : vector<1x8x128xf32>, vector<1x8x128xf32>, vector<1x8x8xf32> -> vector<1x8x8xf32>
    "tpu.trace_stop"() : () -> ()
    %c0_10 = arith.constant 0 : index
    %c0_11 = arith.constant 0 : index
    %c0_12 = arith.constant 0 : index
    %11 = vector.load %arg4[%c0_10, %c0_11, %c0_12] : memref<1x4x128xf32, #tpu.memory_space<vmem>>, vector<1x4x128xf32>
    "tpu.trace_start"() <{level = 10 : i32, message = "bsd,bkd->bsk"}> : () -> ()
    %cst_13 = arith.constant dense<0.000000e+00> : vector<1x8x4xf32>
    %12 = tpu.matmul %0, %11, %cst_13 {dimension_numbers = #tpu.dot_dimension_numbers<[2], [2], [1], [1], [0, 0, 0, 1, 1, 1], [0], [0]>} : vector<1x8x128xf32>, vector<1x4x128xf32>, vector<1x8x4xf32> -> vector<1x8x4xf32>
    "tpu.trace_stop"() : () -> ()
    %c0_14 = arith.constant 0 : index
    %c0_15 = arith.constant 0 : index
    %c0_16 = arith.constant 0 : index
    %13 = vector.load %arg5[%c0_14, %c0_15, %c0_16] : memref<1x8x1xf32, #tpu.memory_space<vmem>>, vector<1x8x1xf32>
    %cst_17 = arith.constant 5.000000e-01 : f32
    %14 = vector.broadcast %cst_17 : f32 to vector<1x8x1xf32>
    %15 = arith.cmpf ogt, %13, %14 : vector<1x8x1xf32>
    %cst_18 = arith.constant -9.99999984E+17 : f32
    %16 = vector.shape_cast %15 : vector<1x8x1xi1> to vector<1x8x1xi1>
    %17 = vector.broadcast %16 : vector<1x8x1xi1> to vector<1x8x8xi1>
    %18 = vector.broadcast %cst_18 : f32 to vector<1x8x8xf32>
    %19 = arith.select %17, %18, %10 : vector<1x8x8xi1>, vector<1x8x8xf32>
    %cst_19 = arith.constant -9.99999984E+17 : f32
    %20 = vector.shape_cast %15 : vector<1x8x1xi1> to vector<1x8x1xi1>
    %21 = vector.broadcast %20 : vector<1x8x1xi1> to vector<1x8x4xi1>
    %22 = vector.broadcast %cst_19 : f32 to vector<1x8x4xf32>
    %23 = arith.select %21, %22, %12 : vector<1x8x4xi1>, vector<1x8x4xf32>
    %cst_20 = arith.constant dense<0xFF800000> : vector<1x8xf32>
    %24 = vector.multi_reduction <maximumf>, %19, %cst_20 [2] : vector<1x8x8xf32> to vector<1x8xf32>
    %25 = vector.shape_cast %24 : vector<1x8xf32> to vector<1x8x1xf32>
    %26 = vector.broadcast %25 : vector<1x8x1xf32> to vector<1x8x8xf32>
    %27 = arith.subf %19, %26 : vector<1x8x8xf32>
    %28 = math.exp %27 : vector<1x8x8xf32>
    %cst_21 = arith.constant dense<0.000000e+00> : vector<1x8xf32>
    %29 = vector.multi_reduction <add>, %28, %cst_21 [2] : vector<1x8x8xf32> to vector<1x8xf32>
    %30 = vector.shape_cast %29 : vector<1x8xf32> to vector<1x8x1xf32>
    %31 = tpu.reciprocal %30 {approx = true} : vector<1x8x1xf32> -> vector<1x8x1xf32>
    %32 = vector.broadcast %31 : vector<1x8x1xf32> to vector<1x8x8xf32>
    %33 = arith.mulf %28, %32 : vector<1x8x8xf32>
    %cst_22 = arith.constant dense<0xFF800000> : vector<1x8xf32>
    %34 = vector.multi_reduction <maximumf>, %23, %cst_22 [2] : vector<1x8x4xf32> to vector<1x8xf32>
    %35 = vector.shape_cast %34 : vector<1x8xf32> to vector<1x8x1xf32>
    %36 = vector.broadcast %35 : vector<1x8x1xf32> to vector<1x8x4xf32>
    %37 = arith.subf %23, %36 : vector<1x8x4xf32>
    %38 = math.exp %37 : vector<1x8x4xf32>
    %cst_23 = arith.constant dense<0.000000e+00> : vector<1x8xf32>
    %39 = vector.multi_reduction <add>, %38, %cst_23 [2] : vector<1x8x4xf32> to vector<1x8xf32>
    %40 = vector.shape_cast %39 : vector<1x8xf32> to vector<1x8x1xf32>
    %cst_24 = arith.constant 1.000000e+00 : f32
    %41 = vector.broadcast %cst_24 : f32 to vector<1x8x1xf32>
    %42 = arith.divf %41, %40 : vector<1x8x1xf32>
    %c0_25 = arith.constant 0 : index
    %c0_26 = arith.constant 0 : index
    %c0_27 = arith.constant 0 : index
    %43 = vector.load %arg12[%c0_25, %c0_26, %c0_27] : memref<1x8x1xf32, #tpu.memory_space<vmem>>, vector<1x8x1xf32>
    tpu.vector_store %arg12[%c0_25, %c0_26, %c0_27], %42 {strides = array<i32>} : memref<1x8x1xf32, #tpu.memory_space<vmem>>, vector<1x8x1xf32>,
    "tpu.trace_start"() <{level = 10 : i32, message = "bsn,bnd->bsd"}> : () -> ()
    %cst_28 = arith.constant dense<0.000000e+00> : vector<1x8x128xf32>
    %44 = tpu.matmul %33, %9, %cst_28 {dimension_numbers = #tpu.dot_dimension_numbers<[2], [1], [1], [2], [0, 0, 0, 1, 1, 2], [0], [0]>} : vector<1x8x8xf32>, vector<1x8x128xf32>, vector<1x8x128xf32> -> vector<1x8x128xf32>
    "tpu.trace_stop"() : () -> ()
    %45 = vector.shape_cast %0 : vector<1x8x128xf32> to vector<8x128xf32>
    %46 = vector.shape_cast %44 : vector<1x8x128xf32> to vector<8x128xf32>
    %c0_29 = arith.constant 0 : index
    %c0_30 = arith.constant 0 : index
    %47 = vector.load %arg8[%c0_29, %c0_30] : memref<128x128xf32, #tpu.memory_space<vmem>>, vector<128x128xf32>
    %cst_31 = arith.constant dense<0.000000e+00> : vector<8x128xf32>
    %48 = tpu.matmul %45, %47, %cst_31 {dimension_numbers = #tpu.dot_dimension_numbers<[1], [0], [0], [1], [0, 0, 1, 1], [], []>} : vector<8x128xf32>, vector<128x128xf32>, vector<8x128xf32> -> vector<8x128xf32>
    %c0_32 = arith.constant 0 : index
    %c0_33 = arith.constant 0 : index
    %49 = vector.load %arg9[%c0_32, %c0_33] : memref<128x128xf32, #tpu.memory_space<vmem>>, vector<128x128xf32>
    %cst_34 = arith.constant dense<0.000000e+00> : vector<8x128xf32>
    %50 = tpu.matmul %46, %49, %cst_34 {dimension_numbers = #tpu.dot_dimension_numbers<[1], [0], [0], [1], [0, 0, 1, 1], [], []>} : vector<8x128xf32>, vector<128x128xf32>, vector<8x128xf32> -> vector<8x128xf32>
    %51 = arith.addf %48, %50 : vector<8x128xf32>
    %c0_35 = arith.constant 0 : index
    %c0_36 = arith.constant 0 : index
    %52 = vector.load %arg10[%c0_35, %c0_36] : memref<1x128xf32, #tpu.memory_space<vmem>>, vector<1x128xf32>
    %53 = vector.broadcast %52 : vector<1x128xf32> to vector<8x128xf32>
    %54 = arith.addf %51, %53 : vector<8x128xf32>
    %55 = math.tanh %54 : vector<8x128xf32>
    %56 = vector.shape_cast %55 : vector<8x128xf32> to vector<1x8x128xf32>
    %c0_37 = arith.constant 0 : index
    %c0_38 = arith.constant 0 : index
    %c0_39 = arith.constant 0 : index
    %57 = vector.load %arg11[%c0_37, %c0_38, %c0_39] : memref<1x8x128xf32, #tpu.memory_space<vmem>>, vector<1x8x128xf32>
    tpu.vector_store %arg11[%c0_37, %c0_38, %c0_39], %56 {strides = array<i32>} : memref<1x8x128xf32, #tpu.memory_space<vmem>>, vector<1x8x128xf32>,
    return
  }
  func.func @transform_0(%arg0: i32, %arg1: i32) -> (i32, i32, i32) {
    %c0_i32 = arith.constant 0 : i32
    %c0_i32_0 = arith.constant 0 : i32
    return %arg0, %arg1, %c0_i32 : i32, i32, i32
  }
  func.func @transform_1(%arg0: i32, %arg1: i32) -> (i32, i32, i32) {
    %c0_i32 = arith.constant 0 : i32
    %c0_i32_0 = arith.constant 0 : i32
    %c0_i32_1 = arith.constant 0 : i32
    return %arg0, %c0_i32, %c0_i32_0 : i32, i32, i32
  }
  func.func @transform_2(%arg0: i32, %arg1: i32) -> (i32, i32, i32) {
    %c0_i32 = arith.constant 0 : i32
    %c0_i32_0 = arith.constant 0 : i32
    %c0_i32_1 = arith.constant 0 : i32
    return %arg0, %c0_i32, %c0_i32_0 : i32, i32, i32
  }
  func.func @transform_3(%arg0: i32, %arg1: i32) -> (i32, i32, i32) {
    %c0_i32 = arith.constant 0 : i32
    %c0_i32_0 = arith.constant 0 : i32
    return %arg0, %arg1, %c0_i32 : i32, i32, i32
  }
  func.func @transform_4(%arg0: i32, %arg1: i32) -> (i32, i32) {
    %c0_i32 = arith.constant 0 : i32
    %c0_i32_0 = arith.constant 0 : i32
    %c0_i32_1 = arith.constant 0 : i32
    return %c0_i32, %c0_i32_0 : i32, i32
  }
  func.func @transform_5(%arg0: i32, %arg1: i32) -> (i32, i32) {
    %c0_i32 = arith.constant 0 : i32
    %c0_i32_0 = arith.constant 0 : i32
    %c0_i32_1 = arith.constant 0 : i32
    return %c0_i32, %c0_i32_0 : i32, i32
  }
  func.func @transform_6(%arg0: i32, %arg1: i32) -> (i32, i32) {
    %c0_i32 = arith.constant 0 : i32
    %c0_i32_0 = arith.constant 0 : i32
    %c0_i32_1 = arith.constant 0 : i32
    return %c0_i32, %c0_i32_0 : i32, i32
  }
  func.func @transform_7(%arg0: i32, %arg1: i32) -> (i32, i32) {
    %c0_i32 = arith.constant 0 : i32
    %c0_i32_0 = arith.constant 0 : i32
    %c0_i32_1 = arith.constant 0 : i32
    return %c0_i32, %c0_i32_0 : i32, i32
  }
  func.func @transform_8(%arg0: i32, %arg1: i32) -> (i32, i32) {
    %c0_i32 = arith.constant 0 : i32
    %c0_i32_0 = arith.constant 0 : i32
    %c0_i32_1 = arith.constant 0 : i32
    return %c0_i32, %c0_i32_0 : i32, i32
  }
  func.func @transform_9(%arg0: i32, %arg1: i32) -> (i32, i32, i32) {
    %c0_i32 = arith.constant 0 : i32
    %c0_i32_0 = arith.constant 0 : i32
    return %arg0, %arg1, %c0_i32 : i32, i32, i32
  }
  func.func @transform_10(%arg0: i32, %arg1: i32) -> (i32, i32, i32) {
    %c0_i32 = arith.constant 0 : i32
    %c0_i32_0 = arith.constant 0 : i32
    return %arg0, %arg1, %c0_i32 : i32, i32, i32
  }
}

</mosaic_0001>

<bundles_post_ra>
// kernel: tpu_custom_call.1
= control target key start
LH: loop header
LB: loop body
LE: loop exit
PB: predicated region body
PF: predicated region fallthrough
CT: control target
= control target key end

     0   :  { %s2375_s0 = inlined_call_operand.vmem [shape: f32[2,16,128], index: 0, kind: input, shape index: {}]   ;;  %s2376_s1 = inlined_call_operand.hbm [shape: f32[2,8,128], index: 1, kind: input, shape index: {}]   ;;  %s2377_s2 = inlined_call_operand.hbm [shape: f32[2,4,128], index: 2, kind: input, shape index: {}]   ;;  %s2378_s3 = inlined_call_operand.vmem [shape: f32[2,16,1], index: 3, kind: input, shape index: {}]   ;;  %s2379_s4 = inlined_call_operand.hbm [shape: f32[128,128], index: 4, kind: input, shape index: {}]   ;;  %s2380_s5 = inlined_call_operand.vmem [shape: f32[1,128], index: 5, kind: input, shape index: {}]   ;;  %s2381_s6 = inlined_call_operand.hbm [shape: f32[128,128], index: 6, kind: input, shape index: {}]   ;;  %s2382_s7 = inlined_call_operand.hbm [shape: f32[128,128], index: 7, kind: input, shape index: {}]   ;;  %s2383_s8 = inlined_call_operand.vmem [shape: f32[1,128], index: 8, kind: input, shape index: {}]   ;;  %s2384_s9 = inlined_call_operand.hbm [shape: f32[2,16,128], index: 9, kind: output, shape index: {0}]   ;;  %s2385_s10 = inlined_call_operand.vmem [shape: f32[2,16,1], index: 10, kind: output, shape index: {1}]  }
   0x1   :  { %2398 = sst [smem:[#allocation25_spill]] %s2375_s0 }
   0x2   :  { %2399 = sst [smem:[#allocation26_spill]] %s2376_s1 }
   0x3   :  { %2400 = sst [smem:[#allocation27_spill]] %s2379_s4 }
   0x4   :  { %2401 = sst [smem:[#allocation28_spill]] %s2381_s6 }
   0x5   :  { %2402 = sst [smem:[#allocation29_spill]] %s2382_s7 }
   0x6   :  { %2403 = sst [smem:[#allocation30_spill]] %s2383_s8 }
   0x7   :  { %2404 = sst [smem:[#allocation31_spill]] %s2384_s9 }
   0x8   :  { %2405 = sst [smem:[#allocation32_spill]] %s2385_s10 }
   0x9   :  { %16 = vsyncpa [#allocation3], 0 }
   0xa   :  { %18 = vsyncpa [#allocation3 + $0x1], 0 }
   0xb   :  { %19 = vsyncpa [#allocation6], 0 }
   0xc   :  { %21 = vsyncpa [#allocation6 + $0x1], 0 }
   0xd   :  { %22 = vsyncpa [#allocation9], 0 }
   0xe   :  { %23 = vsyncpa [#allocation4], 0 }
   0xf   :  { %25 = vsyncpa [#allocation4 + $0x1], 0  ;;  %s2011_s13 = smov 0   ;;  %s2013_s14 = smov 0  }
  0x10   :  { %s2015_s15 = smov 0   ;;  %s2017_s16 = smov 0  }
  0x11   :  { %s2019_s17 = smov 0   ;;  %s2021_s18 = smov 0  }
  0x12   :  { %s2023_s19 = smov 0   ;;  %s2025_s20 = smov 0  }
  0x13   :  { %s2027_s21 = smov 0   ;;  %s2029_s22 = smov 0  }
  0x14   :  { %s2031_s23 = smov 0  }
  0x15 LB: > { %2406 = sst [smem:[#allocation17_spill]] %s1903_s13  ;;  %s2065_s24 = sadd.s32 4294967295, %s1943_s23   ;;  %s1943_s23 = sphi %s2031_s23, %s31_s23   ;;  %s1939_s22 = sphi %s2029_s22, %s2452_s22   ;;  %s1935_s21 = sphi %s2027_s21, %s2444_s21   ;;  %s1931_s20 = sphi %s2025_s20, %s2451_s20   ;;  %s1927_s19 = sphi %s2023_s19, %s2443_s19   ;;  %s1923_s18 = sphi %s2021_s18, %s2450_s18   ;;  %s1919_s17 = sphi %s2019_s17, %s2449_s17   ;;  %s1915_s16 = sphi %s2017_s16, %s2448_s16   ;;  %s1911_s15 = sphi %s2015_s15, %s2447_s15   ;;  %s1907_s14 = sphi %s2013_s14, %s2446_s14   ;;  %s1903_s13 = sphi %s2011_s13, %s2441_s13  }
  0x16   : > { %2407 = sst [smem:[#allocation18_spill]] %s1907_s14  ;;  %s1313_s25 = sadd.s32 4294967294, %s1943_s23  }
  0x17   : > { %2408 = sst [smem:[#allocation19_spill]] %s1935_s21  ;;  %p91_p0 = scmp.ne.s32.totalorder %s1919_s17, %s1915_s16 }
  0x18   : > { %p2391_p1 = scmp.eq.s32.totalorder %s2065_s24, 0  ;;  %p275_p2 = scmp.ne.s32.totalorder %s1911_s15, %s1907_s14 }
  0x19   : > { %p276_p4 = scmp.eq.s32.totalorder %s2065_s24, 3  ;;  %p281_p5 = scmp.ne.s32.totalorder %s1907_s14, %s1903_s13 }
  0x1a   : > { %p2075_p3 = por %p2391_p1, %p91_p0  ;;  %p282_p6 = scmp.eq.s32.totalorder %s1313_s25, 3 }
  0x1b   : > { %p2082_p7 = por %p276_p4, %p275_p2  ;;  %p1314_p8 = scmp.ge.s32.totalorder %s1943_s23, 1 }
  0x1c   : > { %s2409_s27 = scalar_select %p2075_p3, 1, 0 }
  0x1d   : > { %s2410_s28 = scalar_select %p2082_p7, 1, 0 }
  0x1e   : > { %p2087_p9 = por %p282_p6, %p281_p5  ;;  %p317_p10 = scmp.lt.s32.totalorder %s1943_s23, 5 }
  0x1f   : > { %2411 = sst [smem:[#allocation20_spill]] %s2410_s28  ;;  %s1945_s11 = smov [#allocation7]  }
  0x20   : > { %s2412_s29 = scalar_select %p2087_p9, 1, 0 }
  0x21   : > { %p2092_p11 = pnand %p1314_p8, %p317_p10  ;;  %s329_s12 = sshll.u32 %s1945_s11, 4  ;;  %s330_s12 = int_to_ptr.vmem [resolvable:$true] %s329_s12 }
  0x22   : > { %2413 = sst [smem:[#allocation21_spill]] %s2412_s29  ;;  %s1946_s25 = smov [#allocation8]  }
  0x23   : > { %p1539_p12 = pneg %p2092_p11  ;;  %s345_s26 = sshll.u32 %s1946_s25, 4  ;;  %s346_s26 = int_to_ptr.vmem [resolvable:$true] %s345_s26 }
  0x24   : > { %s1947_s29 = smov [#allocation10]   ;;  %s1688_s9 = scalar_lea.vmem %s330_s12, 2048 }
  0x25   : > { %p2100_p13 = pnand %p1539_p12, %p2391_p1  ;;  %s358_s13 = sshll.u32 %s1947_s29, 4  ;;  %s359_s13 = int_to_ptr.vmem [resolvable:$true] %s358_s13 }
  0x26   : > { %p1689_p2 = scmp.ne.s32.totalorder %s330_s12, %s1688_s9  ;;  %p1696_p6 = scmp.lt.s32.totalorder %s330_s12, %s330_s12 }
  0x27   : > { %p1679_p0 = pneg %p2100_p13  ;;  %p1697_p8 = scmp.lt.s32.totalorder %s1688_s9, %s1688_s9 }
  0x29   : > { %p1691_p4 = pnand %p1689_p2, %p1679_p0  ;;  %p1698_p10 = por %p1697_p8, %p1696_p6 }
  0x2b   : > { %p1692_p5 = pneg %p1691_p4 }
  0x2d   : > { %p1699_p12 = pnand %p1698_p10, %p1692_p5 }
  0x2f   : > { %1702 = shalt.err (!%p1699_p12)
}
  0x30   : > { %s1948_s11 = smov 128   ;;  %s1949_s25 = smov 8  }
  0x31   : > { %s2416_s4 = sld [smem:[#allocation27_spill]]  ;;  %s1714_s8 = scalar_lea.vmem %s346_s26, 2048 }
  0x32   : > { %p1715_p1 = scmp.ne.s32.totalorder %s346_s26, %s1714_s8  ;;  %p1722_p9 = scmp.lt.s32.totalorder %s346_s26, %s346_s26 }
  0x33   : > { %p1723_p7 = scmp.lt.s32.totalorder %s1714_s8, %s1714_s8 }
  0x34   : > { %p1717_p2 = pnand %p1715_p1, %p1679_p0 }
  0x35   : > { %p1724_p6 = por %p1723_p7, %p1722_p9 }
  0x36   : > { %p1718_p4 = pneg %p1717_p2 }
  0x37   : > { %1542 = dma.hbm_to_vmem [thread:$0]  (!%p2100_p13), %s2416_s4, 2048, %s330_s12, [#allocation6], %s1948_s11, %s1948_s11, %s1949_s25  }
  0x38   : > { %p1725_p5 = pnand %p1724_p6, %p1718_p4 }
  0x3a   : > { %1728 = shalt.err (!%p1725_p5)
}
  0x3b   : > { %s2417_s6 = sld [smem:[#allocation28_spill]]  ;;  %s1740_s28 = scalar_lea.vmem %s359_s13, 2048 }
  0x3c   : > { %p1741_p8 = scmp.ne.s32.totalorder %s359_s13, %s1740_s28  ;;  %p1748_p12 = scmp.lt.s32.totalorder %s359_s13, %s359_s13 }
  0x3d   : > { %p1749_p2 = scmp.lt.s32.totalorder %s1740_s28, %s1740_s28 }
  0x3e   : > { %p1743_p10 = pnand %p1741_p8, %p1679_p0 }
  0x3f   : > { %p1750_p3 = por %p1749_p2, %p1748_p12 }
  0x40   : > { %p1744_p1 = pneg %p1743_p10 }
  0x41   : > { %1545 = dma.hbm_to_vmem [thread:$0]  (!%p2100_p13), %s2417_s6, 2048, %s346_s26, [#allocation9], %s1948_s11, %s1948_s11, %s1949_s25  }
  0x42   : > { %p1751_p7 = pnand %p1750_p3, %p1744_p1 }
  0x44   : > { %1754 = shalt.err (!%p1751_p7)
}
  0x45   : > { %s2418_s7 = sld [smem:[#allocation29_spill]]  ;;  %s40_s14 = sadd.s32 1, %s1935_s21 }
  0x46   : > { %p41_p3 = scmp.ge.s32.totalorder %s40_s14, 2  ;;  %s43_s26 = sadd.s32 1, %s1939_s22 }
  0x47   : > { %s78_s29 = sadd.s32 1, %s1923_s18  ;;  %p85_p9 = scmp.ne.s32.totalorder %s1923_s18, %s1919_s17 }
  0x48   : > { %s2454_s14 = smov (%p41_p3, %s40_s14), 0  ;;  %s2456_s26 = smov (!%p41_p3, %s43_s26), %s1939_s22 }
  0x49   : > { %2419 = sst [smem:[#allocation22_spill]] %s2454_s14  ;;  %p86_p0 = scmp.eq.s32.totalorder %s1943_s23, 0 }
  0x4a   : > { %s261_s16 = ssub.s32 %s1935_s21, %s2454_s14  ;;  %p45_p4 = scmp.ge.s32.totalorder %s2456_s26, 2 }
  0x4b   : > { %1548 = dma.hbm_to_vmem [thread:$0]  (!%p2100_p13), %s2418_s7, 2048, %s359_s13, [#allocation9], %s1948_s11, %s1948_s11, %s1949_s25  }
  0x4c   : > { %p1563_p6 = scmp.lt.s32.totalorder %s1943_s23, 4  ;;  %p2142_p13 = por %p86_p0, %p85_p9 }
  0x4d   : > { %s2147_s11 = sand.u32 1, %s1923_s18   ;;  %s2458_s26 = smov (%p45_p4, %s2456_s26), 0 }
  0x4e   : > { %2421 = sst [smem:[#allocation23_spill]] %s2458_s26  ;;  %s1319_s25 = sshll.u32 %s2147_s11, 3 }
  0x4f   : > { %s75_s9 = ssub.s32 %s1939_s22, %s2458_s26  ;;  %s1320_s8 = sshll.u32 %s1939_s22, 7 }
  0x50   : > { %p76_p5 = scmp.eq.s32.totalorder %s75_s9, 0  ;;  %s262_s28 = sor.u32 %s261_s16, %s75_s9 }
  0x51   : > { %p263_p8 = scmp.eq.s32.totalorder %s262_s28, 0  ;;  %s2423_s4 = sadd.s32 1, %s1911_s15 }
  0x52   : > { %s2156_s12 = scalar_select %p76_p5, %s1923_s18, %s78_s29  }
  0x53   : > { %s2161_s6 = scalar_select %p263_p8, %s1911_s15, %s2423_s4  }
  0x54   : > { %2422 = sst [smem:[#allocation24_spill]] %s2156_s12  ;;  %s390_s10 = scalar_lea.vmem [#allocation2], %s1319_s25 }
  0x55   : > { %s2424_s1 = sld [smem:[#allocation26_spill]]  ;;  %s397_s0 = sshll.u32 %s390_s10, 4  ;;  %s398_s0 = int_to_ptr.vmem [resolvable:$true] %s397_s0 }
  0x56   : > { %p2170_p10 = pnand %p1563_p6, %p2142_p13  ;;  %s404_s29 = sand.u32 1, %s1943_s23  }
  0x57   : > { %s1321_s16 = sshll.u32 %s2147_s11, 2  ;;  %s387_s9 = scalar_lea.sflag [#allocation3], %s2147_s11 }
  0x58   : > { %p1757_p1 = pneg %p2170_p10  ;;  %s1768_s4 = scalar_lea.vmem %s398_s0, 128 }
  0x59   : > { %p1769_p12 = scmp.ne.s32.totalorder %s398_s0, %s1768_s4  ;;  %s1950_s7 = smov [#allocation2]  }
  0x5a   : > { %s1773_s10 = sshll.u32 %s1950_s7, 4  ;;  %s1774_s10 = int_to_ptr.vmem [resolvable:$false] %s1773_s10 }
  0x5b   : > { %s395_s21 = scalar_lea.hbm %s2424_s1, %s1320_s8  ;;  %p1771_p2 = pnand %p1769_p12, %p1757_p1 }
  0x5c   : > { %s1775_s14 = scalar_lea.vmem %s1774_s10, 256  ;;  %p1776_p3 = scmp.lt.s32.totalorder %s398_s0, %s1774_s10 }
  0x5d   : > { %p1772_p7 = pneg %p1771_p2  ;;  %p1777_p9 = scmp.lt.s32.totalorder %s1775_s14, %s1768_s4 }
  0x5f   : > { %p1778_p0 = por %p1777_p9, %p1776_p3 }
  0x61   : > { %p1779_p4 = pnand %p1778_p0, %p1772_p7 }
  0x63   : > { %1782 = shalt.err (!%p1779_p4)
}
  0x64   : > { %1552 = dma.hbm_to_vmem [thread:$0]  (!%p2170_p10), %s395_s21, 128, %s398_s0, %s387_s9  }
  0x65   : > { %s1322_s13 = sshll.u32 %s1939_s22, 6  ;;  %s408_s8 = scalar_lea.vmem [#allocation5], %s1321_s16 }
  0x66   : > { %s413_s28 = scalar_lea.hbm %s2377_s2, %s1322_s13  ;;  %s415_s1 = sshll.u32 %s408_s8, 4  ;;  %s416_s1 = int_to_ptr.vmem [resolvable:$true] %s415_s1 }
  0x67   : > { %s405_s7 = scalar_lea.sflag [#allocation6], %s404_s29  ;;  %s1796_s12 = scalar_lea.vmem %s416_s1, 64 }
  0x68   : > { %p1797_p6 = scmp.ne.s32.totalorder %s416_s1, %s1796_s12  ;;  %s1951_s4 = smov [#allocation5]  }
  0x69   : > { %s1801_s10 = sshll.u32 %s1951_s4, 4  ;;  %s1802_s10 = int_to_ptr.vmem [resolvable:$false] %s1801_s10 }
  0x6a   : > { %p1799_p13 = pnand %p1797_p6, %p1757_p1  ;;  %s1803_s14 = scalar_lea.vmem %s1802_s10, 128 }
  0x6b   : > { %p1804_p8 = scmp.lt.s32.totalorder %s416_s1, %s1802_s10  ;;  %p1805_p12 = scmp.lt.s32.totalorder %s1803_s14, %s1796_s12 }
  0x6c   : > { %p1800_p5 = pneg %p1799_p13 }
  0x6d   : > { %p1806_p2 = por %p1805_p12, %p1804_p8 }
  0x6f   : > { %p1807_p7 = pnand %p1806_p2, %p1800_p5 }
  0x71   : > { %1810 = shalt.err (!%p1807_p7)
}
  0x72   : > { %1555 = dma.hbm_to_vmem [thread:$0]  (!%p2170_p10), %s413_s28, 64, %s416_s1, %s405_s7  }
  0x73   : > { %435 = sbr.rel (%p2092_p11) target bundleno = 1300 (0x514), region = 56  ;;  %s437_s0 = sand.u32 (!%p2092_p11), 1, %s1919_s17  }
  0x74   : > { %s1324_s21 = sshll.u32 (!%p2092_p11), %s437_s0, 3  ;;  %s438_s29 = scalar_lea.sflag (!%p2092_p11), [#allocation3], %s437_s0 }
  0x75   : > { %s2196_s16 = scalar_lea.vmem (!%p2092_p11), [#allocation2], %s1324_s21  ;;  %p2426_p1 = scmp.ne.s32.totalorder (!%p2092_p11), %s2409_s27, 0 }
  0x78   : > { %1882 = dma.done.wait (%p2426_p1), %s438_s29, 128  }
  0x79   : > { %1884 = vsyncadd (%p2426_p1), %s438_s29, 4294967168  ;;  %s446_s12 = sand.u32 1, %s2065_s24   ;;  %s1325_s26 = sshll.u32 %s437_s0, 2 }
  0x7a   : > { %s447_s1 = scalar_lea.sflag [#allocation6], %s446_s12  ;;  %s2203_s9 = scalar_lea.vmem [#allocation5], %s1325_s26 }
  0x7b   : > { %1886 = dma.done.wait (%p2426_p1), %s447_s1, 64  }
  0x7c   : > { %1888 = vsyncadd (%p2426_p1), %s447_s1, 4294967232  ;;  %p2427_p11 = scmp.eq.s32.totalorder %s2065_s24, 0 }
  0x7e   : > { %1890 = dma.done.wait (%p2427_p11), [#allocation6], 2048   ;;  %p2428_p10 = pmov %p2427_p11 }
  0x80   : > { %1892 = vsyncadd (%p2428_p10), [#allocation6], 4294965248  ;;  %p2429_p3 = pmov %p2428_p10 }
  0x82   : > { %1894 = dma.done.wait (%p2429_p3), [#allocation9], 4096   ;;  %p2430_p9 = pmov %p2429_p3 }
  0x83   : > { %v1952_v0 = vmov 0.0   ;;  %vm1953_vm0 = vmmov 0   ;;  %v569_v1 = vld [vmem:[#allocation7 + $0x78] sm:$0xff]  ;;  %v568_v2 = vld [vmem:[#allocation7 + $0x70] sm:$0xff]  ;;  %v567_v3 = vld [vmem:[#allocation7 + $0x68] sm:$0xff]  ;;  %p528_p0 = scmp.lt.s32.totalorder %s1931_s20, 1 }
  0x84   : > { %1896 = vsyncadd (%p2430_p9), [#allocation9], 4294963200  ;;  %1401 = vmatprep.subr.mxu0 %v1952_v0  ;;  %1433 = vmatprep.mubr.msk.f32.mxu0 %vm1953_vm0, %v1952_v0  ;;  %v566_v4 = vld [vmem:[#allocation7 + $0x60] sm:$0xff]  ;;  %v565_v5 = vld [vmem:[#allocation7 + $0x58] sm:$0xff]  ;;  %p530_p4 = scmp.lt.s32.totalorder %s1927_s19, 1  ;;  %v1954_v18 = vmov 0  }
  0x85   : > { %1436 = vmatprep.subr.mxu1 %v1952_v0  ;;  %1438 = vmatprep.mubr.msk.f32.mxu1 %vm1953_vm0, %v1952_v0  ;;  %v564_v6 = vld [vmem:[#allocation7 + $0x50] sm:$0xff]  ;;  %v563_v7 = vld [vmem:[#allocation7 + $0x48] sm:$0xff]  ;;  %v562_v8 = vld [vmem:[#allocation7 + $0x40] sm:$0xff]  ;;  %s529_s24 = scalar_select %p528_p0, %s1931_s20, 1  ;;  %vm798_vm3 = vcmask 64512   ;;  %vm810_vm4 = vcmask 31744  }
  0x86   : > { %1402 = vmatpush3.msra.mxu0 %v569_v1  ;;  %v561_v9 = vld [vmem:[#allocation7 + $0x38] sm:$0xff]  ;;  %v560_v10 = vld [vmem:[#allocation7 + $0x30] sm:$0xff]  ;;  %v559_v11 = vld [vmem:[#allocation7 + $0x28] sm:$0xff]  ;;  %s531_s27 = scalar_select %p530_p4, %s1927_s19, 1  ;;  %1664 = vset.pattern.permute.xlu0 %v1954_v18  ;;  %vm822_vm5 = vcmask 7168  }
  0x87   : > { %1403 = vmatprep.subr.mxu0 %v1952_v0  ;;  %v558_v12 = vld [vmem:[#allocation7 + $0x20] sm:$0xff]  ;;  %v557_v13 = vld [vmem:[#allocation7 + $0x18] sm:$0xff]  ;;  %v556_v14 = vld [vmem:[#allocation7 + $0x10] sm:$0xff]  ;;  %s1330_s30 = sshll.u32 %s529_s24, 1  ;;  %s2431_s0 = sld [smem:[#allocation25_spill]] }
  0x88   : > { %1404 = vmatpush3.msra.mxu0 %v568_v2  ;;  %v555_v15 = vld [vmem:[#allocation7 + $0x8] sm:$0xff]  ;;  %v554_v16 = vld [vmem:[#allocation7] sm:$0xff]  ;;  %s533_s13 = sadd.s32 %s1330_s30, %s531_s27  ;;  %v718_v27 = vld [vmem:[%s2203_s9] sm:$0xf]  ;;  %s2432_s12 = sld [smem:[#allocation32_spill]] }
  0x89   : > { %1405 = vmatprep.subr.mxu0 %v1952_v0  ;;  %v553_v17 = vld [vmem:[%s2196_s16] sm:$0xff]  ;;  %s2246_s11 = sshll.u32 %s533_s13, 3  ;;  %v912_v50 = vld [vmem:[#allocation8 + $0x78] sm:$0xff]  ;;  %v909_v56 = vld [vmem:[#allocation8 + $0x60] sm:$0xff]  ;;  %s2433_s26 = sld [smem:[#allocation18_spill]] }
  0x8a   : > { %1406 = vmatpush3.msra.mxu0 %v567_v3  ;;  %s543_s8 = scalar_lea.vmem %s2378_s3, %s2246_s11  ;;  %v1336_v21 = vld [vmem:[%s2380_s5] ss:$0 sm:$0xff]  ;;  %v928_v51 = vld [vmem:[#allocation10 + $0x78] sm:$0xff]  ;;  %v911_v52 = vld [vmem:[#allocation8 + $0x70] sm:$0xff]  ;;  %s2434_s27 = sld [smem:[#allocation30_spill]] }
  0x8b   : > { %1407 = vmatprep.subr.mxu0 %v1952_v0  ;;  %v789_v19 = vld [vmem:[%s543_s8] sm:$0xff]  ;;  %v927_v53 = vld [vmem:[#allocation10 + $0x70] sm:$0xff]  ;;  %v925_v57 = vld [vmem:[#allocation10 + $0x60] sm:$0xff]  ;;  %s2435_s30 = sld [smem:[#allocation20_spill]]  ;;  %s1340_s25 = sshll.u32 %s1931_s20, 1 }
  0x8c   : > { %1408 = vmatpush3.msra.mxu0 %v566_v4  ;;  %vm790_vm1 = vcmp.gt.f32.partialorder %v789_v19, 0.5  ;;  %v910_v54 = vld [vmem:[#allocation8 + $0x68] sm:$0xff]  ;;  %v908_v58 = vld [vmem:[#allocation8 + $0x58] sm:$0xff]  ;;  %v907_v60 = vld [vmem:[#allocation8 + $0x50] sm:$0xff]  ;;  %s1099_s28 = sadd.s32 %s1927_s19, %s1340_s25 }
  0x8d   : > { %1409 = vmatprep.subr.mxu0 %v1952_v0  ;;  %v791_v20 = vsel %vm790_vm1, 1, %v1954_v18  ;;  %s535_s21 = scalar_lea.vmem %s2431_s0, %s2246_s11  ;;  %v926_v55 = vld [vmem:[#allocation10 + $0x68] sm:$0xff]  ;;  %v924_v59 = vld [vmem:[#allocation10 + $0x58] sm:$0xff]  ;;  %v923_v61 = vld [vmem:[#allocation10 + $0x50] sm:$0xff]  ;;  %s1341_s8 = sshll.u32 %s1099_s28, 7 }
  0x8e   : > { %1410 = vmatpush3.msra.mxu0 %v565_v5  ;;  %793 = vperm.xlu0 %1664, %v791_v20   ;;  %v2259_v26 = vld [vmem:[%s535_s21] sm:$0xff]  ;;  %v905_v1 = vld [vmem:[#allocation8 + $0x40] sm:$0xff]  ;;  %v904_v3 = vld [vmem:[#allocation8 + $0x38] sm:$0xff]  ;;  %s551_s1 = scalar_lea.vmem %s2432_s12, %s2246_s11  ;;  %s2436_s0 = sld [smem:[#allocation31_spill]] }
  0x8f   : > { %1411 = vmatprep.subr.mxu0 %v1952_v0  ;;  %v906_v62 = vld [vmem:[#allocation8 + $0x48] sm:$0xff]  ;;  %v921_v2 = vld [vmem:[#allocation10 + $0x40] sm:$0xff]  ;;  %v920_v4 = vld [vmem:[#allocation10 + $0x38] sm:$0xff]  ;;  %s515_s13 = sand.u32 1, %s2433_s26   ;;  %s1955_s12 = smov [#allocation11]  }
  0x90   : > { %1412 = vmatpush3.msra.mxu0 %v564_v6  ;;  %v922_v63 = vld [vmem:[#allocation10 + $0x48] sm:$0xff]  ;;  %v903_v5 = vld [vmem:[#allocation8 + $0x30] sm:$0xff]  ;;  %v913_v18 = vld [vmem:[#allocation10] sm:$0xff]  ;;  %s1329_s11 = sshll.u32 %s515_s13, 3  ;;  %s1080_s29 = scalar_lea.sflag [#allocation4], %s515_s13 }
  0x91   : > { %1413 = vmatprep.subr.mxu0 %v1952_v0  ;;  %v919_v6 = vld [vmem:[#allocation10 + $0x30] sm:$0xff]  ;;  %s517_s7 = scalar_lea.vmem [#allocation11], %s1329_s11  ;;  %p2437_p13 = scmp.ne.s32.totalorder %s2435_s30, 0 }
  0x92   : > { %1414 = vmatpush3.msra.mxu0 %v563_v7  ;;  %v902_v7 = vld [vmem:[#allocation8 + $0x28] sm:$0xff]  ;;  %s1103_s4 = sshll.u32 %s517_s7, 4  ;;  %s1815_s20 = sshll.u32 %s1955_s12, 4  ;;  %s1104_s4 = int_to_ptr.vmem [resolvable:$true] %s1103_s4  ;;  %s1816_s20 = int_to_ptr.vmem [resolvable:$false] %s1815_s20 }
  0x93   : > { %1415 = vmatprep.subr.mxu0 %v1952_v0  ;;  %s1811_s16 = scalar_lea.vmem %s1104_s4, 128  ;;  %s1817_s19 = scalar_lea.vmem %s1816_s20, 256 }
  0x94   : > { %1416 = vmatpush3.msra.mxu0 %v562_v8  ;;  %v918_v8 = vld [vmem:[#allocation10 + $0x28] sm:$0xff]  ;;  %s2320_s21 = scalar_lea.hbm %s2436_s0, %s1341_s8  ;;  %p1812_p6 = scmp.ne.s32.totalorder %s1104_s4, %s1811_s16 }
  0x95   : > { %1417 = vmatprep.subr.mxu0 %v1952_v0  ;;  %p1818_p12 = scmp.lt.s32.totalorder %s1104_s4, %s1816_s20  ;;  %p1819_p2 = scmp.lt.s32.totalorder %s1817_s19, %s1811_s16 }
  0x96   : > { %1418 = vmatpush3.msra.mxu0 %v561_v9  ;;  %v901_v9 = vld [vmem:[#allocation8 + $0x20] sm:$0xff]  ;;  %p1813_p5 = pnand %p1812_p6, %p2437_p13 }
  0x97   : > { %1419 = vmatprep.subr.mxu0 %v1952_v0  ;;  %p1820_p7 = por %p1819_p2, %p1818_p12 }
  0x98   : > { %1420 = vmatpush3.msra.mxu0 %v560_v10  ;;  %v917_v10 = vld [vmem:[#allocation10 + $0x20] sm:$0xff]  ;;  %p1814_p8 = pneg %p1813_p5 }
  0x99   : > { %1421 = vmatprep.subr.mxu0 %v1952_v0 }
  0x9a   : > { %1422 = vmatpush3.msra.mxu0 %v559_v11  ;;  %v900_v11 = vld [vmem:[#allocation8 + $0x18] sm:$0xff]  ;;  %p1821_p1 = pnand %p1820_p7, %p1814_p8 }
  0x9b   : > { %1423 = vmatprep.subr.mxu0 %v1952_v0 }
  0x9c   : > { %1424 = vmatpush3.msra.mxu0 %v558_v12  ;;  %v916_v12 = vld [vmem:[#allocation10 + $0x18] sm:$0xff] }
  0x9d   : > { %1425 = vmatprep.subr.mxu0 %v1952_v0 }
  0x9e   : > { %1426 = vmatpush3.msra.mxu0 %v557_v13  ;;  %v899_v13 = vld [vmem:[#allocation8 + $0x10] sm:$0xff] }
  0x9f   : > { %1427 = vmatprep.subr.mxu0 %v1952_v0 }
  0xa0   : > { %1428 = vmatpush3.msra.mxu0 %v556_v14  ;;  %v915_v14 = vld [vmem:[#allocation10 + $0x10] sm:$0xff] }
  0xa1   : > { %1429 = vmatprep.subr.mxu0 %v1952_v0 }
  0xa2   : > { %1430 = vmatpush3.msra.mxu0 %v555_v15  ;;  %v898_v15 = vld [vmem:[#allocation8 + $0x8] sm:$0xff] }
  0xa3   : > { %1431 = vmatprep.subr.mxu0 %v1952_v0 }
  0xa4   : > { %1432 = vmatpush3.msra.mxu0 %v554_v16  ;;  %v914_v16 = vld [vmem:[#allocation10 + $0x8] sm:$0xff] }
  0xa5   : > { %1434 = vmatmul.mubr.f32.vlgmr.msra.gmra.mxu0 %v553_v17  ;;  %1486 = vmatprep.subr.mxu0 %v1952_v0  ;;  %v897_v17 = vld [vmem:[#allocation8] sm:$0xff] }
  0xa6   : > { %1518 = vmatprep.mubr.msk.f32.mxu0 %vm1953_vm0, %v1952_v0  ;;  %1487 = vmatpush3.msra.mxu0 %v912_v50 }
  0xa7   : > { %1488 = vmatprep.subr.mxu0 %v1952_v0 }
  0xa8   : > { %1489 = vmatpush3.msra.mxu0 %v911_v52 }
  0xa9   : > { %1490 = vmatprep.subr.mxu0 %v1952_v0 }
  0xaa   : > { %1491 = vmatpush3.msra.mxu0 %v910_v54 }
  0xab   : > { %1492 = vmatprep.subr.mxu0 %v1952_v0 }
  0xac   : > { %1493 = vmatpush3.msra.mxu0 %v909_v56 }
  0xad   : > { %1494 = vmatprep.subr.mxu0 %v1952_v0 }
  0xae   : > { %1495 = vmatpush3.msra.mxu0 %v908_v58 }
  0xaf   : > { %1496 = vmatprep.subr.mxu0 %v1952_v0 }
  0xb0   : > { %1497 = vmatpush3.msra.mxu0 %v907_v60 }
  0xb1   : > { %1498 = vmatprep.subr.mxu0 %v1952_v0 }
  0xb2   : > { %1499 = vmatpush3.msra.mxu0 %v906_v62 }
  0xb3   : > { %1500 = vmatprep.subr.mxu0 %v1952_v0 }
  0xb4   : > { %1501 = vmatpush3.msra.mxu0 %v905_v1 }
  0xb5   : > { %1502 = vmatprep.subr.mxu0 %v1952_v0 }
  0xb6   : > { %1503 = vmatpush3.msra.mxu0 %v904_v3 }
  0xb7   : > { %1504 = vmatprep.subr.mxu0 %v1952_v0 }
  0xb8   : > { %1505 = vmatpush3.msra.mxu0 %v903_v5 }
  0xb9   : > { %1506 = vmatprep.subr.mxu0 %v1952_v0 }
  0xba   : > { %1507 = vmatpush3.msra.mxu0 %v902_v7 }
  0xbb   : > { %1508 = vmatprep.subr.mxu0 %v1952_v0 }
  0xbc   : > { %1509 = vmatpush3.msra.mxu0 %v901_v9 }
  0xbd   : > { %1510 = vmatprep.subr.mxu0 %v1952_v0 }
  0xbe   : > { %1511 = vmatpush3.msra.mxu0 %v900_v11 }
  0xbf   : > { %1512 = vmatprep.subr.mxu0 %v1952_v0 }
  0xc0   : > { %1513 = vmatpush3.msra.mxu0 %v899_v13 }
  0xc1   : > { %1514 = vmatprep.subr.mxu0 %v1952_v0 }
  0xc2   : > { %1515 = vmatpush3.msra.mxu0 %v898_v15 }
  0xc3   : > { %1516 = vmatprep.subr.mxu0 %v1952_v0 }
  0xc4   : > { %1517 = vmatpush3.msra.mxu0 %v897_v17 }
  0xc5   : > { %1519 = vmatmul.mubr.f32.vlgmr.msra.gmra.mxu0 %v2259_v26 }
 0x109   : > { %v794_v28 = vpop.permute.xlu0 %793 }
 0x10a   : > { %vm795_vm2 = vcmp.eq.s32.totalorder %v794_v28, 1 }
 0x165   : > { %v643_v22 = vpop.f32.mrf.mxu0 }
 0x166   : > { %v644_v23 = vadd.f32 %v1336_v21, %v643_v22 }
 0x167   : > { %v1435_v24 = vpop.f32.mrf.mxu0 }
 0x168   : > { %1665 = vtanh.f32 %v644_v23 }
 0x175   : > { %v1666_v25 = vpop.eup %1665 }
 0x176   : > { %1437 = vmatpush3.xpose.msra.mxu1 %v1666_v25 }
 0x177   : > { %1441 = vmatprep.subr.mxu1 %v1952_v0 }
 0x179   : > { %1439 = vmatmul.mubr.f32.vlgmr.msra.gmra.mxu1 %v2259_v26 }
 0x17a   : > { %1442 = vmatpush3.xpose.msra.mxu1 %v718_v27  ;;  %1443 = vmatprep.mubr.msk.f32.mxu1 %vm1953_vm0, %v1952_v0 }
 0x17b   : > { %1446 = vmatprep.subr.mxu1 %v1952_v0 }
 0x17d   : > { %1444 = vmatmul.mubr.f32.vlgmr.msra.gmra.mxu1 %v2259_v26 }
 0x17e   : > { %1447 = vmatpush3.msra.mxu1 %v1666_v25  ;;  %1448 = vmatprep.mubr.msk.f32.mxu1 %vm1953_vm0, %v1952_v0  ;;  %v1338_v25 = vld [vmem:[%s2434_s27] ss:$0 sm:$0xff] }
 0x17f   : > { %1451 = vmatprep.subr.mxu1 %v1952_v0 }
 0x185   : > { %v1065_v22 = vpop.f32.mrf.mxu0 }
 0x187   : > { %v1520_v23 = vpop.f32.mrf.mxu0 }
 0x239   : > { %v714_v29 = vpop.f32.mrf.mxu1 }
 0x23a   : > { %v796_v30 = vsel %vm795_vm2, -1e+18, %v714_v29 }
 0x23b   : > { %v1440_v31 = vpop.f32.mrf.mxu1  ;;  %v799_v32 = vsel %vm798_vm3, %v796_v30, -inf }
 0x23c   : > { %800 = vmax.xlane.f32.xlu0 %v799_v32 }
 0x23d   : > { %v785_v33 = vpop.f32.mrf.mxu1 }
 0x23e   : > { %v797_v34 = vsel %vm795_vm2, -1e+18, %v785_v33 }
 0x23f   : > { %v1445_v35 = vpop.f32.mrf.mxu1  ;;  %v811_v41 = vsel %vm810_vm4, %v797_v34, -inf }
 0x2c5   : > { %v801_v36 = vpop.xlane.xlu0 %800 }
 0x2c6   : > { %v802_v37 = vsub.f32 %v796_v30, %v801_v36 }
 0x2c8   : > { %v803_v38 = vmul.f32 1.442695, %v802_v37 }
 0x2ca   : > { %1667 = vpow2.f32 %v803_v38 }
 0x2d7   : > { %v1668_v39 = vpop.eup %1667 }
 0x2d8   : > { %v805_v40 = vsel %vm798_vm3, %v1668_v39, 0.0 }
 0x2d9   : > { %806 = vadd.xlane.f32.xlu1 %v805_v40 }
 0x2dd   : > { %812 = vmax.xlane.f32.xlu1 %v811_v41 }
 0x362   : > { %v807_v42 = vpop.xlane.xlu1 %806 }
 0x363   : > { %1669 = vrcp.f32 %v807_v42 }
 0x366   : > { %v813_v43 = vpop.xlane.xlu1 %812 }
 0x367   : > { %v814_v44 = vsub.f32 %v797_v34, %v813_v43 }
 0x369   : > { %v815_v45 = vmul.f32 1.442695, %v814_v44 }
 0x36b   : > { %1671 = vpow2.f32 %v815_v45 }
 0x370   : > { %v1670_v46 = vpop.eup %1669 }
 0x371   : > { %v809_v47 = vmul.f32 %v1670_v46, %v1668_v39 }
 0x373   : > { %1449 = vmatmul.mubr.msk.f32.vlgmr.msra.gmra.mxu1 %vm798_vm3, %v809_v47 }
 0x374   : > { %1483 = vmatprep.mubr.msk.f32.mxu1 %vm1953_vm0, %v1952_v0  ;;  %1452 = vmatpush3.msra.mxu1 %v928_v51 }
 0x375   : > { %1453 = vmatprep.subr.mxu1 %v1952_v0 }
 0x376   : > { %1454 = vmatpush3.msra.mxu1 %v927_v53 }
 0x377   : > { %1455 = vmatprep.subr.mxu1 %v1952_v0 }
 0x378   : > { %v1672_v48 = vpop.eup %1671  ;;  %1456 = vmatpush3.msra.mxu1 %v926_v55 }
 0x379   : > { %v817_v49 = vsel %vm810_vm4, %v1672_v48, 0.0  ;;  %1457 = vmatprep.subr.mxu1 %v1952_v0 }
 0x37a   : > { %818 = vadd.xlane.f32.xlu1 %v817_v49  ;;  %1458 = vmatpush3.msra.mxu1 %v925_v57 }
 0x37b   : > { %1459 = vmatprep.subr.mxu1 %v1952_v0 }
 0x37c   : > { %1460 = vmatpush3.msra.mxu1 %v924_v59 }
 0x37d   : > { %1461 = vmatprep.subr.mxu1 %v1952_v0 }
 0x37e   : > { %1462 = vmatpush3.msra.mxu1 %v923_v61 }
 0x37f   : > { %1463 = vmatprep.subr.mxu1 %v1952_v0 }
 0x380   : > { %1464 = vmatpush3.msra.mxu1 %v922_v63 }
 0x381   : > { %1465 = vmatprep.subr.mxu1 %v1952_v0 }
 0x382   : > { %1466 = vmatpush3.msra.mxu1 %v921_v2 }
 0x383   : > { %1467 = vmatprep.subr.mxu1 %v1952_v0 }
 0x384   : > { %1468 = vmatpush3.msra.mxu1 %v920_v4 }
 0x385   : > { %1469 = vmatprep.subr.mxu1 %v1952_v0 }
 0x386   : > { %1470 = vmatpush3.msra.mxu1 %v919_v6 }
 0x387   : > { %1471 = vmatprep.subr.mxu1 %v1952_v0 }
 0x388   : > { %1472 = vmatpush3.msra.mxu1 %v918_v8 }
 0x389   : > { %1473 = vmatprep.subr.mxu1 %v1952_v0 }
 0x38a   : > { %1474 = vmatpush3.msra.mxu1 %v917_v10 }
 0x38b   : > { %1475 = vmatprep.subr.mxu1 %v1952_v0 }
 0x38c   : > { %1476 = vmatpush3.msra.mxu1 %v916_v12 }
 0x38d   : > { %1477 = vmatprep.subr.mxu1 %v1952_v0 }
 0x38e   : > { %1478 = vmatpush3.msra.mxu1 %v915_v14 }
 0x38f   : > { %1479 = vmatprep.subr.mxu1 %v1952_v0 }
 0x390   : > { %1480 = vmatpush3.msra.mxu1 %v914_v16 }
 0x391   : > { %1481 = vmatprep.subr.mxu1 %v1952_v0 }
 0x392   : > { %1482 = vmatpush3.msra.mxu1 %v913_v18 }
 0x403   : > { %v819_v19 = vpop.xlane.xlu1 %818 }
 0x404   : > { %1673 = vrcp.f32 %v819_v19 }
 0x411   : > { %v1674_v20 = vpop.eup %1673 }
 0x412   : > { %823 = vst.msk [vmem:[%s551_s1] sm:$0xff] %vm822_vm5, %v1674_v20 }
 0x433   : > { %v893_v21 = vpop.f32.mrf.mxu1 }
 0x434   : > { %1484 = vmatmul.mubr.f32.vlgmr.msra.gmra.mxu1 %v893_v21 }
 0x435   : > { %v1450_v0 = vpop.f32.mrf.mxu1 }
 0x4f4   : > { %v995_v24 = vpop.f32.mrf.mxu1 }
 0x4f5   : > { %v1066_v26 = vadd.f32 %v1065_v22, %v995_v24 }
 0x4f6   : > { %v1485_v27 = vpop.f32.mrf.mxu1 }
 0x4f7   : > { %v1076_v28 = vadd.f32 %v1338_v25, %v1066_v26 }
 0x4f9   : > { %1675 = vtanh.f32 %v1076_v28 }
 0x506   : > { %v1676_v29 = vpop.eup %1675 }
 0x507   : > { %1078 = vst [vmem:[%s517_s7] sm:$0xff] %v1676_v29 }
 0x508   : > { %1824 = shalt.err (!%p1821_p1)
}
 0x509   : > { %s1825_s26 = scalar_lea.hbm %s2320_s21, 128  ;;  %s1829_s24 = scalar_lea.hbm %s2436_s0, 512 }
 0x50a   : > { %p1826_p11 = scmp.ne.s32.totalorder %s2320_s21, %s1825_s26  ;;  %p1830_p9 = scmp.lt.s32.totalorder %s2320_s21, %s2436_s0 }
 0x50b   : > { %p1831_p0 = scmp.lt.s32.totalorder %s1829_s24, %s1825_s26 }
 0x50c   : > { %p1827_p10 = pnand %p1826_p11, %p2437_p13 }
 0x50d   : > { %p1832_p4 = por %p1831_p0, %p1830_p9 }
 0x50e   : > { %p1828_p3 = pneg %p1827_p10 }
 0x510   : > { %p1833_p6 = pnand %p1832_p4, %p1828_p3 }
 0x512   : > { %1836 = shalt.err (!%p1833_p6)
}
 0x513   : > { %1537 = dma.vmem_to_hbm [thread:$0]  (%p2437_p13), %s1104_s4, 128, %s2320_s21, %s1080_s29  }
 0x514 PF: > { %s2438_s11 = sld [smem:[#allocation17_spill]]  ;;  %p1567_p5 = scmp.ge.s32.totalorder %s1943_s23, 2 }
 0x515   : > { %s2439_s25 = sld [smem:[#allocation21_spill]] }
 0x51a   : > { %s1118_s28 = sand.u32 1, %s2438_s11  }
 0x51b   : > { %p2440_p8 = scmp.ne.s32.totalorder %s2439_s25, 0  ;;  %s1119_s8 = scalar_lea.sflag [#allocation4], %s1118_s28 }
 0x51d   : > { %p1557_p12 = pnand %p1567_p5, %p2440_p8 }
 0x51f   : > { %p1558_p2 = pneg %p1557_p12 }
 0x521   : > { %1898 = dma.done.wait (%p1558_p2), %s1119_s8, 128  }
 0x522   : > { %1900 = vsyncadd (%p1558_p2), %s1119_s8, 4294967168  ;;  %s31_s23 = sadd.s32 1, %s1943_s23   ;;  %s2441_s13 = sld [smem:[#allocation18_spill]] }
 0x523   : > { %p28_p7 = scmp.ge.s32.totalorder %s31_s23, 6   ;;  %s2442_s30 = sld [smem:[#allocation24_spill]] }
 0x524   : > { %s2443_s19 = sld [smem:[#allocation19_spill]]  ;;  %s2446_s14 = smov %s1911_s15 }
 0x525   : > { %s2444_s21 = sld [smem:[#allocation22_spill]]  ;;  %s2447_s15 = smov %s2161_s6 }
 0x526   : > { %s2445_s7 = sld [smem:[#allocation23_spill]]  ;;  %s2448_s16 = smov %s1919_s17 }
 0x527   : > { %s2449_s17 = smov %s1923_s18  ;;  %s2451_s20 = smov %s1939_s22 }
 0x528   :  { %30 = sbr.rel (!%p28_p7) target bundleno = 21 (0x15), region = 144 }
 0x529   : > { %s2450_s18 = smov %s2442_s30 }
 0x52c   : > { %s2452_s22 = smov %s2445_s7 }
 0x52d   :  { %1135 = vsyncpa [#allocation3], 1 }
 0x52e   :  { %1137 = vsyncpa [#allocation3 + $0x1], 1 }
 0x52f   :  { %1138 = vsyncpa [#allocation6], 1 }
 0x530   :  { %1140 = vsyncpa [#allocation6 + $0x1], 1 }
 0x531   :  { %1141 = vsyncpa [#allocation9], 1 }
 0x532   :  { %1142 = vsyncpa [#allocation4], 1 }
 0x533   :  { %1144 = vsyncpa [#allocation4 + $0x1], 1 }

</bundles_post_ra>
